<compile_context>
chip_gen: v6e
topology: v6e:2x2x1
jax: 0.10.0
libtpu: 0.0.40
codegen_flags: <defaults>
</compile_context>

<pallas_src>
import math

import numpy as np
import jax
import jax.numpy as jnp
from jax import lax
from jax.experimental import pallas as pl
from jax.experimental.pallas import tpu as pltpu

# ----------------------------- config (small) ------------------------------
BATCH = 2
SEQ = 8
HIDDEN = 32
INTER = 64
NUM_HEADS = 4
NUM_KV_HEADS = 2
HEAD_DIM = 16
HALF = HEAD_DIM // 2
N_REP = NUM_HEADS // NUM_KV_HEADS
RMS_EPS = 1e-6
ROPE_THETA = 10000.0

NQ1 = NUM_HEADS * HALF          # 32  width of Q first-half block
NK1 = NUM_KV_HEADS * HALF       # 16  width of K first-half block
ROT = NQ1 + NK1                 # 48  rotated width ([Q1 | K1])
QW = NUM_HEADS * HEAD_DIM       # 64
KW = NUM_KV_HEADS * HEAD_DIM    # 32
QKV_W = QW + 2 * KW             # 128 (lane-dense fused projection width)
GU_W = 2 * INTER                # 128 (lane-dense fused gate/up width)

# MXU input dtype. f32 keeps the torch module's numerics; set to jnp.bfloat16 on
# v5e/v6e/v7x for MXU peak (accumulation stays f32 via preferred_element_type).
MXU_DTYPE = jnp.float32


def _half_perm(n_heads: int, head_dim: int) -> np.ndarray:
    """Column indices of every head's FIRST half, concatenated head-by-head."""
    half = head_dim // 2
    return np.concatenate(
        [h * head_dim + np.arange(half) for h in range(n_heads)]
    ).astype(np.int32)


_Q1 = _half_perm(NUM_HEADS, HEAD_DIM)
_K1 = _half_perm(NUM_KV_HEADS, HEAD_DIM)


# ------------------------------- the kernel --------------------------------
def _rms_norm(x, one_plus_w, eps):
    # matches GemmaRMSNorm: x * rsqrt(mean(x^2) + eps) * (1 + w)
    var = jnp.mean(x * x, axis=-1, keepdims=True)
    return x * lax.rsqrt(var + eps) * one_plus_w


def _mm(a, b):
    return jnp.dot(a.astype(MXU_DTYPE), b.astype(MXU_DTYPE),
                   preferred_element_type=jnp.float32)


def _mm_nt(a, b):
    # a @ b.T without materializing a transpose (dot_general "nt" form)
    return lax.dot_general(a.astype(MXU_DTYPE), b.astype(MXU_DTYPE),
                           (((1,), (1,)), ((), ())),
                           preferred_element_type=jnp.float32)


def gemma_decoder_kernel(
    x_ref,         # (BS, H)        folded hidden states
    mask_ref,      # (BS, BS)       additive, block-diagonal over batches
    cos_ref,       # (BS, ROT)      cos tiled to [Q-half widths | K-half widths]
    sin_ref,       # (BS, ROT)
    w_in_ln_ref,   # (1, H)
    wqkv_ref,      # (H, 128)       fused [Q1 | K1 | Q2 | K2 | V] columns
    wo_ref,        # (QW, H)
    w_post_ln_ref, # (1, H)
    wgu_ref,       # (H, 128)       fused [gate | up] columns
    wd_ref,        # (INTER, H)
    out_ref,       # (BS, H)
):
    scale = 1.0 / math.sqrt(HEAD_DIM)

    x = x_ref[...]
    mask = mask_ref[...]
    cos = cos_ref[...]
    sin = sin_ref[...]

    # ---- hoisted broadcasts ----
    one_plus_w_in = 1.0 + w_in_ln_ref[...]
    one_plus_w_post = 1.0 + w_post_ln_ref[...]

    # ---- input RMSNorm ----
    normed = _rms_norm(x, one_plus_w_in, RMS_EPS)

    # ---- fused q/k/v projection: ONE lane-dense (BS,128) matmul ----
    qkv = _mm(normed, wqkv_ref[...])          # layout [Q1 | K1 | Q2 | K2 | V]
    p1 = qkv[:, :ROT]                         # [Q1 | K1]
    p2 = qkv[:, ROT:2 * ROT]                  # [Q2 | K2]
    v = qkv[:, 2 * ROT:]                      # V, standard per-kv-head layout

    # ---- full-width RoPE over Q and K together (pure VPU) ----
    e1 = p1 * cos - p2 * sin
    e2 = p2 * cos + p1 * sin
    qe1, ke1 = e1[:, :NQ1], e1[:, NQ1:]
    qe2, ke2 = e2[:, :NQ1], e2[:, NQ1:]

    # ---- per-head attention (rope(q)·rope(k) = qe1·ke1 + qe2·ke2), unrolled ----
    head_outs = []
    for h in range(NUM_HEADS):
        kvh = h // N_REP
        qh1 = qe1[:, h * HALF:(h + 1) * HALF]
        qh2 = qe2[:, h * HALF:(h + 1) * HALF]
        kh1 = ke1[:, kvh * HALF:(kvh + 1) * HALF]
        kh2 = ke2[:, kvh * HALF:(kvh + 1) * HALF]

        scores = (_mm_nt(qh1, kh1) + _mm_nt(qh2, kh2)) * scale + mask

        # explicit softmax: divide replaced by EUP reciprocal
        m = jnp.max(scores, axis=-1, keepdims=True)
        p = jnp.exp(scores - m)
        denom = jnp.sum(p, axis=-1, keepdims=True)
        probs = p * pl.reciprocal(denom, approx=True)

        head_outs.append(_mm(probs, v[:, kvh * HEAD_DIM:(kvh + 1) * HEAD_DIM]))

    # ---- fused output projection: one matmul against the full wo ----
    attn = _mm(jnp.concatenate(head_outs, axis=-1), wo_ref[...])

    # ---- first residual ----
    h1 = x + attn

    # ---- post-attention RMSNorm + MLP (fused gate/up matmul) ----
    normed2 = _rms_norm(h1, one_plus_w_post, RMS_EPS)
    gu = _mm(normed2, wgu_ref[...])           # (BS, 128) = [gate | up]
    gate = gu[:, :INTER]
    up = gu[:, INTER:]
    act = jax.nn.gelu(gate, approximate=True) * up   # gelu(tanh) as in torch
    down = _mm(act, wd_ref[...])

    out_ref[...] = h1 + down


# ------------------------------ JAX wrapper ---------------------------------
@jax.jit
def gemma_decoder_layer(hidden_states, attention_mask, cos_half, sin_half, params):
    B, S, H = hidden_states.shape
    BS = B * S

    # fold batch into rows
    x2d = hidden_states.reshape(BS, H).astype(jnp.float32)

    # block-diagonal additive mask (cross-batch logits masked with -1e9)
    mask_b = attention_mask[:, 0].astype(jnp.float32)      # (B, S, S)
    folded_mask = jnp.full((BS, BS), -1e9, dtype=jnp.float32)
    for b in range(B):
        folded_mask = folded_mask.at[b * S:(b + 1) * S, b * S:(b + 1) * S].set(mask_b[b])

    # RoPE tables tiled once to the combined [Q halves | K halves] width
    cos2 = cos_half.reshape(BS, HALF).astype(jnp.float32)
    sin2 = sin_half.reshape(BS, HALF).astype(jnp.float32)
    cos_qk = jnp.concatenate([jnp.tile(cos2, (1, NUM_HEADS)),
                              jnp.tile(cos2, (1, NUM_KV_HEADS))], axis=1)
    sin_qk = jnp.concatenate([jnp.tile(sin2, (1, NUM_HEADS)),
                              jnp.tile(sin2, (1, NUM_KV_HEADS))], axis=1)

    # offline column permutation + fusion: one (H, 128) QKV weight, one (H, 128) gate/up weight
    wq, wk, wv = params["wq"], params["wk"], params["wv"]
    wqkv = jnp.concatenate(
        [wq[:, _Q1], wk[:, _K1], wq[:, _Q1 + HALF], wk[:, _K1 + HALF], wv], axis=1)
    wgu = jnp.concatenate([params["wg"], params["wu"]], axis=1)

    args = (x2d, folded_mask, cos_qk, sin_qk,
            params["w_in_ln"], wqkv, params["wo"],
            params["w_post_ln"], wgu, params["wd"])

    def full_spec(shape):
        n = len(shape)
        return pl.BlockSpec(shape, lambda i, n=n: (0,) * n)

    in_specs = [full_spec(a.shape) for a in args]
    out_spec = full_spec((BS, H))

    # advisory cost estimate for the XLA scheduler
    flops = (
        2 * BS * H * QKV_W                                               # fused qkv projection
        + NUM_HEADS * (2 * 2 * BS * BS * HALF + 2 * BS * BS * HEAD_DIM)  # scores + probs@v
        + 2 * BS * QW * H                                                # o projection
        + 2 * BS * H * GU_W + 2 * BS * INTER * H                         # MLP
    )
    transcendentals = NUM_HEADS * BS * (BS + 1) + 2 * BS + BS * INTER
    bytes_accessed = sum(int(np.prod(a.shape)) * 4 for a in args) + BS * H * 4

    out2d = pl.pallas_call(
        gemma_decoder_kernel,
        out_shape=jax.ShapeDtypeStruct((BS, H), jnp.float32),
        grid=(1,),
        in_specs=in_specs,
        out_specs=out_spec,
        compiler_params=pltpu.CompilerParams(dimension_semantics=("arbitrary",)),
        cost_estimate=pl.CostEstimate(flops=int(flops),
                                      transcendentals=int(transcendentals),
                                      bytes_accessed=int(bytes_accessed)),
    )(*args)
    return out2d.reshape(B, S, H)


# --------------------------- pure-JAX reference -----------------------------
def _rotate_half(x):
    x1 = x[..., : x.shape[-1] // 2]
    x2 = x[..., x.shape[-1] // 2:]
    return jnp.concatenate((-x2, x1), axis=-1)


def reference_layer(hs, mask, cos_half, sin_half, params):
    def rms(x, w):
        var = jnp.mean(x * x, axis=-1, keepdims=True)
        return x * lax.rsqrt(var + RMS_EPS) * (1.0 + w)

    B, S, H = hs.shape
    x = hs
    normed = rms(x, params["w_in_ln"][0])
    q = normed @ params["wq"]
    k = normed @ params["wk"]
    v = normed @ params["wv"]
    q = q.reshape(B, S, NUM_HEADS, HEAD_DIM).transpose(0, 2, 1, 3)
    k = k.reshape(B, S, NUM_KV_HEADS, HEAD_DIM).transpose(0, 2, 1, 3)
    v = v.reshape(B, S, NUM_KV_HEADS, HEAD_DIM).transpose(0, 2, 1, 3)

    cos = jnp.concatenate([cos_half, cos_half], axis=-1)[:, None, :, :]
    sin = jnp.concatenate([sin_half, sin_half], axis=-1)[:, None, :, :]
    q = q * cos + _rotate_half(q) * sin
    k = k * cos + _rotate_half(k) * sin

    k = jnp.repeat(k, N_REP, axis=1)
    v = jnp.repeat(v, N_REP, axis=1)
    scores = (q @ k.transpose(0, 1, 3, 2)) / math.sqrt(HEAD_DIM) + mask
    probs = jax.nn.softmax(scores.astype(jnp.float32), axis=-1)
    attn = probs @ v
    attn = attn.transpose(0, 2, 1, 3).reshape(B, S, NUM_HEADS * HEAD_DIM)
    attn = attn @ params["wo"]

    h1 = x + attn
    normed2 = rms(h1, params["w_post_ln"][0])
    gate = normed2 @ params["wg"]
    up = normed2 @ params["wu"]
    down = (jax.nn.gelu(gate, approximate=True) * up) @ params["wd"]
    return h1 + down


# ----------------------------------- main -----------------------------------
if __name__ == "__main__":
    key = jax.random.PRNGKey(0)
    keys = jax.random.split(key, 12)

    def w(k, shape, scale=0.05):
        return (scale * jax.random.normal(k, shape)).astype(jnp.float32)

    params = {
        "w_in_ln":   w(keys[0], (1, HIDDEN), 0.1),
        "wq":        w(keys[1], (HIDDEN, NUM_HEADS * HEAD_DIM)),
        "wk":        w(keys[2], (HIDDEN, NUM_KV_HEADS * HEAD_DIM)),
        "wv":        w(keys[3], (HIDDEN, NUM_KV_HEADS * HEAD_DIM)),
        "wo":        w(keys[4], (NUM_HEADS * HEAD_DIM, HIDDEN)),
        "w_post_ln": w(keys[5], (1, HIDDEN), 0.1),
        "wg":        w(keys[6], (HIDDEN, INTER)),
        "wu":        w(keys[7], (HIDDEN, INTER)),
        "wd":        w(keys[8], (INTER, HIDDEN)),
    }

    hidden_states = jax.random.normal(keys[9], (BATCH, SEQ, HIDDEN), dtype=jnp.float32)

    # causal additive attention mask [B, 1, S, S]
    causal = jnp.tril(jnp.ones((SEQ, SEQ), dtype=jnp.bool_))
    attention_mask = jnp.where(causal, 0.0, -1e9).astype(jnp.float32)
    attention_mask = jnp.broadcast_to(attention_mask, (BATCH, 1, SEQ, SEQ))

    # rotary tables (half head-dim; the full Gemma cos/sin is this duplicated along -1)
    position_ids = jnp.broadcast_to(jnp.arange(SEQ, dtype=jnp.float32), (BATCH, SEQ))
    inv_freq = 1.0 / (ROPE_THETA ** (jnp.arange(0, HEAD_DIM, 2, dtype=jnp.float32) / HEAD_DIM))
    freqs = position_ids[:, :, None] * inv_freq[None, None, :]   # (B, S, HEAD_DIM//2)
    cos_half = jnp.cos(freqs).astype(jnp.float32)
    sin_half = jnp.sin(freqs).astype(jnp.float32)

    # TODO(synk): KVCache update (stateful cross-call concat) and attention dropout
    # (p=0.0, training-only) are not represented in this single-layer forward kernel.

    out = gemma_decoder_layer(hidden_states, attention_mask, cos_half, sin_half, params)
    out = jax.block_until_ready(out)

    ref = reference_layer(hidden_states, attention_mask, cos_half, sin_half, params)
    assert out.shape == (BATCH, SEQ, HIDDEN)
    assert jnp.all(jnp.isfinite(out))
    # approx=True reciprocal in the softmax costs a few ulps vs the exact reference
    assert jnp.allclose(out, ref, rtol=1e-3, atol=1e-3), float(jnp.max(jnp.abs(out - ref)))

    print("KERNEL_OK")
</pallas_src>

<mosaic_0001>
module attributes {stable_mosaic.version = 11 : i64} {
  func.func @gemma_decoder_kernel(%arg0: i32, %arg1: memref<16x32xf32, #tpu.memory_space<vmem>>, %arg2: memref<16x16xf32, #tpu.memory_space<vmem>>, %arg3: memref<16x48xf32, #tpu.memory_space<vmem>>, %arg4: memref<16x48xf32, #tpu.memory_space<vmem>>, %arg5: memref<1x32xf32, #tpu.memory_space<vmem>>, %arg6: memref<32x128xf32, #tpu.memory_space<vmem>>, %arg7: memref<64x32xf32, #tpu.memory_space<vmem>>, %arg8: memref<1x32xf32, #tpu.memory_space<vmem>>, %arg9: memref<32x128xf32, #tpu.memory_space<vmem>>, %arg10: memref<64x32xf32, #tpu.memory_space<vmem>>, %arg11: memref<16x32xf32, #tpu.memory_space<vmem>>) attributes {dimension_semantics = [#tpu.dimension_semantics<arbitrary>], iteration_bounds = array<i64: 1>, scalar_prefetch = 0 : i64, scratch_operands = 0 : i64, tpu.core_type = #tpu.core_type<tc>, window_params = [{pipeline_mode = #tpu.pipeline_mode<synchronous>, transform_indices = @transform_0, window_bounds = array<i64: 16, 32>}, {pipeline_mode = #tpu.pipeline_mode<synchronous>, transform_indices = @transform_1, window_bounds = array<i64: 16, 16>}, {pipeline_mode = #tpu.pipeline_mode<synchronous>, transform_indices = @transform_2, window_bounds = array<i64: 16, 48>}, {pipeline_mode = #tpu.pipeline_mode<synchronous>, transform_indices = @transform_3, window_bounds = array<i64: 16, 48>}, {pipeline_mode = #tpu.pipeline_mode<synchronous>, transform_indices = @transform_4, window_bounds = array<i64: 1, 32>}, {pipeline_mode = #tpu.pipeline_mode<synchronous>, transform_indices = @transform_5, window_bounds = array<i64: 32, 128>}, {pipeline_mode = #tpu.pipeline_mode<synchronous>, transform_indices = @transform_6, window_bounds = array<i64: 64, 32>}, {pipeline_mode = #tpu.pipeline_mode<synchronous>, transform_indices = @transform_7, window_bounds = array<i64: 1, 32>}, {pipeline_mode = #tpu.pipeline_mode<synchronous>, transform_indices = @transform_8, window_bounds = array<i64: 32, 128>}, {pipeline_mode = #tpu.pipeline_mode<synchronous>, transform_indices = @transform_9, window_bounds = array<i64: 64, 32>}, {pipeline_mode = #tpu.pipeline_mode<synchronous>, transform_indices = @transform_10, window_bounds = array<i64: 16, 32>}]} {
    %c0 = arith.constant 0 : index
    %c0_0 = arith.constant 0 : index
    %0 = vector.load %arg1[%c0, %c0_0] : memref<16x32xf32, #tpu.memory_space<vmem>>, vector<16x32xf32>
    %c0_1 = arith.constant 0 : index
    %c0_2 = arith.constant 0 : index
    %1 = vector.load %arg2[%c0_1, %c0_2] : memref<16x16xf32, #tpu.memory_space<vmem>>, vector<16x16xf32>
    %c0_3 = arith.constant 0 : index
    %c0_4 = arith.constant 0 : index
    %2 = vector.load %arg3[%c0_3, %c0_4] : memref<16x48xf32, #tpu.memory_space<vmem>>, vector<16x48xf32>
    %c0_5 = arith.constant 0 : index
    %c0_6 = arith.constant 0 : index
    %3 = vector.load %arg4[%c0_5, %c0_6] : memref<16x48xf32, #tpu.memory_space<vmem>>, vector<16x48xf32>
    %c0_7 = arith.constant 0 : index
    %c0_8 = arith.constant 0 : index
    %4 = vector.load %arg5[%c0_7, %c0_8] : memref<1x32xf32, #tpu.memory_space<vmem>>, vector<1x32xf32>
    %cst = arith.constant 1.000000e+00 : f32
    %5 = vector.broadcast %cst : f32 to vector<1x32xf32>
    %6 = arith.addf %5, %4 : vector<1x32xf32>
    %c0_9 = arith.constant 0 : index
    %c0_10 = arith.constant 0 : index
    %7 = vector.load %arg8[%c0_9, %c0_10] : memref<1x32xf32, #tpu.memory_space<vmem>>, vector<1x32xf32>
    %cst_11 = arith.constant 1.000000e+00 : f32
    %8 = vector.broadcast %cst_11 : f32 to vector<1x32xf32>
    %9 = arith.addf %8, %7 : vector<1x32xf32>
    %10 = arith.mulf %0, %0 : vector<16x32xf32>
    %cst_12 = arith.constant dense<0.000000e+00> : vector<16xf32>
    %11 = vector.multi_reduction <add>, %10, %cst_12 [1] : vector<16x32xf32> to vector<16xf32>
    %12 = vector.shape_cast %11 : vector<16xf32> to vector<16x1xf32>
    %cst_13 = arith.constant 3.200000e+01 : f32
    %13 = vector.broadcast %cst_13 : f32 to vector<16x1xf32>
    %14 = arith.divf %12, %13 : vector<16x1xf32>
    %cst_14 = arith.constant 9.99999997E-7 : f32
    %15 = vector.broadcast %cst_14 : f32 to vector<16x1xf32>
    %16 = arith.addf %14, %15 : vector<16x1xf32>
    %17 = math.rsqrt %16 : vector<16x1xf32>
    %18 = vector.broadcast %17 : vector<16x1xf32> to vector<16x32xf32>
    %19 = arith.mulf %0, %18 : vector<16x32xf32>
    %20 = vector.broadcast %6 : vector<1x32xf32> to vector<16x32xf32>
    %21 = arith.mulf %19, %20 : vector<16x32xf32>
    %c0_15 = arith.constant 0 : index
    %c0_16 = arith.constant 0 : index
    %22 = vector.load %arg6[%c0_15, %c0_16] : memref<32x128xf32, #tpu.memory_space<vmem>>, vector<32x128xf32>
    %cst_17 = arith.constant dense<0.000000e+00> : vector<16x128xf32>
    %23 = tpu.matmul %21, %22, %cst_17 {dimension_numbers = #tpu.dot_dimension_numbers<[1], [0], [0], [1], [0, 0, 1, 1], [], []>} : vector<16x32xf32>, vector<32x128xf32>, vector<16x128xf32> -> vector<16x128xf32>
    %24 = vector.extract_strided_slice %23 {offsets = [0, 0], sizes = [16, 48], strides = [1, 1]} : vector<16x128xf32> to vector<16x48xf32>
    %25 = vector.extract_strided_slice %23 {offsets = [0, 48], sizes = [16, 48], strides = [1, 1]} : vector<16x128xf32> to vector<16x48xf32>
    %26 = vector.extract_strided_slice %23 {offsets = [0, 96], sizes = [16, 32], strides = [1, 1]} : vector<16x128xf32> to vector<16x32xf32>
    %27 = arith.mulf %24, %2 : vector<16x48xf32>
    %28 = arith.mulf %25, %3 : vector<16x48xf32>
    %29 = arith.subf %27, %28 : vector<16x48xf32>
    %30 = arith.mulf %25, %2 : vector<16x48xf32>
    %31 = arith.mulf %24, %3 : vector<16x48xf32>
    %32 = arith.addf %30, %31 : vector<16x48xf32>
    %33 = vector.extract_strided_slice %29 {offsets = [0, 0], sizes = [16, 32], strides = [1, 1]} : vector<16x48xf32> to vector<16x32xf32>
    %34 = vector.extract_strided_slice %29 {offsets = [0, 32], sizes = [16, 16], strides = [1, 1]} : vector<16x48xf32> to vector<16x16xf32>
    %35 = vector.extract_strided_slice %32 {offsets = [0, 0], sizes = [16, 32], strides = [1, 1]} : vector<16x48xf32> to vector<16x32xf32>
    %36 = vector.extract_strided_slice %32 {offsets = [0, 32], sizes = [16, 16], strides = [1, 1]} : vector<16x48xf32> to vector<16x16xf32>
    %37 = vector.extract_strided_slice %33 {offsets = [0, 0], sizes = [16, 8], strides = [1, 1]} : vector<16x32xf32> to vector<16x8xf32>
    %38 = vector.extract_strided_slice %35 {offsets = [0, 0], sizes = [16, 8], strides = [1, 1]} : vector<16x32xf32> to vector<16x8xf32>
    %39 = vector.extract_strided_slice %34 {offsets = [0, 0], sizes = [16, 8], strides = [1, 1]} : vector<16x16xf32> to vector<16x8xf32>
    %40 = vector.extract_strided_slice %36 {offsets = [0, 0], sizes = [16, 8], strides = [1, 1]} : vector<16x16xf32> to vector<16x8xf32>
    %cst_18 = arith.constant dense<0.000000e+00> : vector<16x16xf32>
    %41 = tpu.matmul %37, %39, %cst_18 {dimension_numbers = #tpu.dot_dimension_numbers<[1], [1], [0], [0], [0, 0, 1, 0], [], []>} : vector<16x8xf32>, vector<16x8xf32>, vector<16x16xf32> -> vector<16x16xf32>
    %cst_19 = arith.constant dense<0.000000e+00> : vector<16x16xf32>
    %42 = tpu.matmul %38, %40, %cst_19 {dimension_numbers = #tpu.dot_dimension_numbers<[1], [1], [0], [0], [0, 0, 1, 0], [], []>} : vector<16x8xf32>, vector<16x8xf32>, vector<16x16xf32> -> vector<16x16xf32>
    %43 = arith.addf %41, %42 : vector<16x16xf32>
    %cst_20 = arith.constant 2.500000e-01 : f32
    %44 = vector.broadcast %cst_20 : f32 to vector<16x16xf32>
    %45 = arith.mulf %43, %44 : vector<16x16xf32>
    %46 = arith.addf %45, %1 : vector<16x16xf32>
    %cst_21 = arith.constant dense<0xFF800000> : vector<16xf32>
    %47 = vector.multi_reduction <maximumf>, %46, %cst_21 [1] : vector<16x16xf32> to vector<16xf32>
    %48 = vector.shape_cast %47 : vector<16xf32> to vector<16x1xf32>
    %49 = vector.broadcast %48 : vector<16x1xf32> to vector<16x16xf32>
    %50 = arith.subf %46, %49 : vector<16x16xf32>
    %51 = math.exp %50 : vector<16x16xf32>
    %cst_22 = arith.constant dense<0.000000e+00> : vector<16xf32>
    %52 = vector.multi_reduction <add>, %51, %cst_22 [1] : vector<16x16xf32> to vector<16xf32>
    %53 = vector.shape_cast %52 : vector<16xf32> to vector<16x1xf32>
    %54 = tpu.reciprocal %53 {approx = true} : vector<16x1xf32> -> vector<16x1xf32>
    %55 = vector.broadcast %54 : vector<16x1xf32> to vector<16x16xf32>
    %56 = arith.mulf %51, %55 : vector<16x16xf32>
    %57 = vector.extract_strided_slice %26 {offsets = [0, 0], sizes = [16, 16], strides = [1, 1]} : vector<16x32xf32> to vector<16x16xf32>
    %cst_23 = arith.constant dense<0.000000e+00> : vector<16x16xf32>
    %58 = tpu.matmul %56, %57, %cst_23 {dimension_numbers = #tpu.dot_dimension_numbers<[1], [0], [0], [1], [0, 0, 1, 1], [], []>} : vector<16x16xf32>, vector<16x16xf32>, vector<16x16xf32> -> vector<16x16xf32>
    %59 = vector.extract_strided_slice %33 {offsets = [0, 8], sizes = [16, 8], strides = [1, 1]} : vector<16x32xf32> to vector<16x8xf32>
    %60 = vector.extract_strided_slice %35 {offsets = [0, 8], sizes = [16, 8], strides = [1, 1]} : vector<16x32xf32> to vector<16x8xf32>
    %61 = vector.extract_strided_slice %34 {offsets = [0, 0], sizes = [16, 8], strides = [1, 1]} : vector<16x16xf32> to vector<16x8xf32>
    %62 = vector.extract_strided_slice %36 {offsets = [0, 0], sizes = [16, 8], strides = [1, 1]} : vector<16x16xf32> to vector<16x8xf32>
    %cst_24 = arith.constant dense<0.000000e+00> : vector<16x16xf32>
    %63 = tpu.matmul %59, %61, %cst_24 {dimension_numbers = #tpu.dot_dimension_numbers<[1], [1], [0], [0], [0, 0, 1, 0], [], []>} : vector<16x8xf32>, vector<16x8xf32>, vector<16x16xf32> -> vector<16x16xf32>
    %cst_25 = arith.constant dense<0.000000e+00> : vector<16x16xf32>
    %64 = tpu.matmul %60, %62, %cst_25 {dimension_numbers = #tpu.dot_dimension_numbers<[1], [1], [0], [0], [0, 0, 1, 0], [], []>} : vector<16x8xf32>, vector<16x8xf32>, vector<16x16xf32> -> vector<16x16xf32>
    %65 = arith.addf %63, %64 : vector<16x16xf32>
    %cst_26 = arith.constant 2.500000e-01 : f32
    %66 = vector.broadcast %cst_26 : f32 to vector<16x16xf32>
    %67 = arith.mulf %65, %66 : vector<16x16xf32>
    %68 = arith.addf %67, %1 : vector<16x16xf32>
    %cst_27 = arith.constant dense<0xFF800000> : vector<16xf32>
    %69 = vector.multi_reduction <maximumf>, %68, %cst_27 [1] : vector<16x16xf32> to vector<16xf32>
    %70 = vector.shape_cast %69 : vector<16xf32> to vector<16x1xf32>
    %71 = vector.broadcast %70 : vector<16x1xf32> to vector<16x16xf32>
    %72 = arith.subf %68, %71 : vector<16x16xf32>
    %73 = math.exp %72 : vector<16x16xf32>
    %cst_28 = arith.constant dense<0.000000e+00> : vector<16xf32>
    %74 = vector.multi_reduction <add>, %73, %cst_28 [1] : vector<16x16xf32> to vector<16xf32>
    %75 = vector.shape_cast %74 : vector<16xf32> to vector<16x1xf32>
    %76 = tpu.reciprocal %75 {approx = true} : vector<16x1xf32> -> vector<16x1xf32>
    %77 = vector.broadcast %76 : vector<16x1xf32> to vector<16x16xf32>
    %78 = arith.mulf %73, %77 : vector<16x16xf32>
    %79 = vector.extract_strided_slice %26 {offsets = [0, 0], sizes = [16, 16], strides = [1, 1]} : vector<16x32xf32> to vector<16x16xf32>
    %cst_29 = arith.constant dense<0.000000e+00> : vector<16x16xf32>
    %80 = tpu.matmul %78, %79, %cst_29 {dimension_numbers = #tpu.dot_dimension_numbers<[1], [0], [0], [1], [0, 0, 1, 1], [], []>} : vector<16x16xf32>, vector<16x16xf32>, vector<16x16xf32> -> vector<16x16xf32>
    %81 = vector.extract_strided_slice %33 {offsets = [0, 16], sizes = [16, 8], strides = [1, 1]} : vector<16x32xf32> to vector<16x8xf32>
    %82 = vector.extract_strided_slice %35 {offsets = [0, 16], sizes = [16, 8], strides = [1, 1]} : vector<16x32xf32> to vector<16x8xf32>
    %83 = vector.extract_strided_slice %34 {offsets = [0, 8], sizes = [16, 8], strides = [1, 1]} : vector<16x16xf32> to vector<16x8xf32>
    %84 = vector.extract_strided_slice %36 {offsets = [0, 8], sizes = [16, 8], strides = [1, 1]} : vector<16x16xf32> to vector<16x8xf32>
    %cst_30 = arith.constant dense<0.000000e+00> : vector<16x16xf32>
    %85 = tpu.matmul %81, %83, %cst_30 {dimension_numbers = #tpu.dot_dimension_numbers<[1], [1], [0], [0], [0, 0, 1, 0], [], []>} : vector<16x8xf32>, vector<16x8xf32>, vector<16x16xf32> -> vector<16x16xf32>
    %cst_31 = arith.constant dense<0.000000e+00> : vector<16x16xf32>
    %86 = tpu.matmul %82, %84, %cst_31 {dimension_numbers = #tpu.dot_dimension_numbers<[1], [1], [0], [0], [0, 0, 1, 0], [], []>} : vector<16x8xf32>, vector<16x8xf32>, vector<16x16xf32> -> vector<16x16xf32>
    %87 = arith.addf %85, %86 : vector<16x16xf32>
    %cst_32 = arith.constant 2.500000e-01 : f32
    %88 = vector.broadcast %cst_32 : f32 to vector<16x16xf32>
    %89 = arith.mulf %87, %88 : vector<16x16xf32>
    %90 = arith.addf %89, %1 : vector<16x16xf32>
    %cst_33 = arith.constant dense<0xFF800000> : vector<16xf32>
    %91 = vector.multi_reduction <maximumf>, %90, %cst_33 [1] : vector<16x16xf32> to vector<16xf32>
    %92 = vector.shape_cast %91 : vector<16xf32> to vector<16x1xf32>
    %93 = vector.broadcast %92 : vector<16x1xf32> to vector<16x16xf32>
    %94 = arith.subf %90, %93 : vector<16x16xf32>
    %95 = math.exp %94 : vector<16x16xf32>
    %cst_34 = arith.constant dense<0.000000e+00> : vector<16xf32>
    %96 = vector.multi_reduction <add>, %95, %cst_34 [1] : vector<16x16xf32> to vector<16xf32>
    %97 = vector.shape_cast %96 : vector<16xf32> to vector<16x1xf32>
    %98 = tpu.reciprocal %97 {approx = true} : vector<16x1xf32> -> vector<16x1xf32>
    %99 = vector.broadcast %98 : vector<16x1xf32> to vector<16x16xf32>
    %100 = arith.mulf %95, %99 : vector<16x16xf32>
    %101 = vector.extract_strided_slice %26 {offsets = [0, 16], sizes = [16, 16], strides = [1, 1]} : vector<16x32xf32> to vector<16x16xf32>
    %cst_35 = arith.constant dense<0.000000e+00> : vector<16x16xf32>
    %102 = tpu.matmul %100, %101, %cst_35 {dimension_numbers = #tpu.dot_dimension_numbers<[1], [0], [0], [1], [0, 0, 1, 1], [], []>} : vector<16x16xf32>, vector<16x16xf32>, vector<16x16xf32> -> vector<16x16xf32>
    %103 = vector.extract_strided_slice %33 {offsets = [0, 24], sizes = [16, 8], strides = [1, 1]} : vector<16x32xf32> to vector<16x8xf32>
    %104 = vector.extract_strided_slice %35 {offsets = [0, 24], sizes = [16, 8], strides = [1, 1]} : vector<16x32xf32> to vector<16x8xf32>
    %105 = vector.extract_strided_slice %34 {offsets = [0, 8], sizes = [16, 8], strides = [1, 1]} : vector<16x16xf32> to vector<16x8xf32>
    %106 = vector.extract_strided_slice %36 {offsets = [0, 8], sizes = [16, 8], strides = [1, 1]} : vector<16x16xf32> to vector<16x8xf32>
    %cst_36 = arith.constant dense<0.000000e+00> : vector<16x16xf32>
    %107 = tpu.matmul %103, %105, %cst_36 {dimension_numbers = #tpu.dot_dimension_numbers<[1], [1], [0], [0], [0, 0, 1, 0], [], []>} : vector<16x8xf32>, vector<16x8xf32>, vector<16x16xf32> -> vector<16x16xf32>
    %cst_37 = arith.constant dense<0.000000e+00> : vector<16x16xf32>
    %108 = tpu.matmul %104, %106, %cst_37 {dimension_numbers = #tpu.dot_dimension_numbers<[1], [1], [0], [0], [0, 0, 1, 0], [], []>} : vector<16x8xf32>, vector<16x8xf32>, vector<16x16xf32> -> vector<16x16xf32>
    %109 = arith.addf %107, %108 : vector<16x16xf32>
    %cst_38 = arith.constant 2.500000e-01 : f32
    %110 = vector.broadcast %cst_38 : f32 to vector<16x16xf32>
    %111 = arith.mulf %109, %110 : vector<16x16xf32>
    %112 = arith.addf %111, %1 : vector<16x16xf32>
    %cst_39 = arith.constant dense<0xFF800000> : vector<16xf32>
    %113 = vector.multi_reduction <maximumf>, %112, %cst_39 [1] : vector<16x16xf32> to vector<16xf32>
    %114 = vector.shape_cast %113 : vector<16xf32> to vector<16x1xf32>
    %115 = vector.broadcast %114 : vector<16x1xf32> to vector<16x16xf32>
    %116 = arith.subf %112, %115 : vector<16x16xf32>
    %117 = math.exp %116 : vector<16x16xf32>
    %cst_40 = arith.constant dense<0.000000e+00> : vector<16xf32>
    %118 = vector.multi_reduction <add>, %117, %cst_40 [1] : vector<16x16xf32> to vector<16xf32>
    %119 = vector.shape_cast %118 : vector<16xf32> to vector<16x1xf32>
    %120 = tpu.reciprocal %119 {approx = true} : vector<16x1xf32> -> vector<16x1xf32>
    %121 = vector.broadcast %120 : vector<16x1xf32> to vector<16x16xf32>
    %122 = arith.mulf %117, %121 : vector<16x16xf32>
    %123 = vector.extract_strided_slice %26 {offsets = [0, 16], sizes = [16, 16], strides = [1, 1]} : vector<16x32xf32> to vector<16x16xf32>
    %cst_41 = arith.constant dense<0.000000e+00> : vector<16x16xf32>
    %124 = tpu.matmul %122, %123, %cst_41 {dimension_numbers = #tpu.dot_dimension_numbers<[1], [0], [0], [1], [0, 0, 1, 1], [], []>} : vector<16x16xf32>, vector<16x16xf32>, vector<16x16xf32> -> vector<16x16xf32>
    %125 = tpu.concatenate %58, %80, %102, %124 in 1 : vector<16x16xf32>, vector<16x16xf32>, vector<16x16xf32>, vector<16x16xf32> -> vector<16x64xf32>
    %c0_42 = arith.constant 0 : index
    %c0_43 = arith.constant 0 : index
    %126 = vector.load %arg7[%c0_42, %c0_43] : memref<64x32xf32, #tpu.memory_space<vmem>>, vector<64x32xf32>
    %cst_44 = arith.constant dense<0.000000e+00> : vector<16x32xf32>
    %127 = tpu.matmul %125, %126, %cst_44 {dimension_numbers = #tpu.dot_dimension_numbers<[1], [0], [0], [1], [0, 0, 1, 1], [], []>} : vector<16x64xf32>, vector<64x32xf32>, vector<16x32xf32> -> vector<16x32xf32>
    %128 = arith.addf %0, %127 : vector<16x32xf32>
    %129 = arith.mulf %128, %128 : vector<16x32xf32>
    %cst_45 = arith.constant dense<0.000000e+00> : vector<16xf32>
    %130 = vector.multi_reduction <add>, %129, %cst_45 [1] : vector<16x32xf32> to vector<16xf32>
    %131 = vector.shape_cast %130 : vector<16xf32> to vector<16x1xf32>
    %cst_46 = arith.constant 3.200000e+01 : f32
    %132 = vector.broadcast %cst_46 : f32 to vector<16x1xf32>
    %133 = arith.divf %131, %132 : vector<16x1xf32>
    %cst_47 = arith.constant 9.99999997E-7 : f32
    %134 = vector.broadcast %cst_47 : f32 to vector<16x1xf32>
    %135 = arith.addf %133, %134 : vector<16x1xf32>
    %136 = math.rsqrt %135 : vector<16x1xf32>
    %137 = vector.broadcast %136 : vector<16x1xf32> to vector<16x32xf32>
    %138 = arith.mulf %128, %137 : vector<16x32xf32>
    %139 = vector.broadcast %9 : vector<1x32xf32> to vector<16x32xf32>
    %140 = arith.mulf %138, %139 : vector<16x32xf32>
    %c0_48 = arith.constant 0 : index
    %c0_49 = arith.constant 0 : index
    %141 = vector.load %arg9[%c0_48, %c0_49] : memref<32x128xf32, #tpu.memory_space<vmem>>, vector<32x128xf32>
    %cst_50 = arith.constant dense<0.000000e+00> : vector<16x128xf32>
    %142 = tpu.matmul %140, %141, %cst_50 {dimension_numbers = #tpu.dot_dimension_numbers<[1], [0], [0], [1], [0, 0, 1, 1], [], []>} : vector<16x32xf32>, vector<32x128xf32>, vector<16x128xf32> -> vector<16x128xf32>
    %143 = vector.extract_strided_slice %142 {offsets = [0, 0], sizes = [16, 64], strides = [1, 1]} : vector<16x128xf32> to vector<16x64xf32>
    %144 = vector.extract_strided_slice %142 {offsets = [0, 64], sizes = [16, 64], strides = [1, 1]} : vector<16x128xf32> to vector<16x64xf32>
    %145 = arith.mulf %143, %143 : vector<16x64xf32>
    %146 = arith.mulf %143, %145 : vector<16x64xf32>
    %cst_51 = arith.constant 4.471500e-02 : f32
    %147 = vector.broadcast %cst_51 : f32 to vector<16x64xf32>
    %148 = arith.mulf %147, %146 : vector<16x64xf32>
    %149 = arith.addf %143, %148 : vector<16x64xf32>
    %cst_52 = arith.constant 0.797884583 : f32
    %150 = vector.broadcast %cst_52 : f32 to vector<16x64xf32>
    %151 = arith.mulf %150, %149 : vector<16x64xf32>
    %152 = math.tanh %151 : vector<16x64xf32>
    %cst_53 = arith.constant 1.000000e+00 : f32
    %153 = vector.broadcast %cst_53 : f32 to vector<16x64xf32>
    %154 = arith.addf %153, %152 : vector<16x64xf32>
    %cst_54 = arith.constant 5.000000e-01 : f32
    %155 = vector.broadcast %cst_54 : f32 to vector<16x64xf32>
    %156 = arith.mulf %155, %154 : vector<16x64xf32>
    %157 = arith.mulf %143, %156 : vector<16x64xf32>
    %158 = arith.mulf %157, %144 : vector<16x64xf32>
    %c0_55 = arith.constant 0 : index
    %c0_56 = arith.constant 0 : index
    %159 = vector.load %arg10[%c0_55, %c0_56] : memref<64x32xf32, #tpu.memory_space<vmem>>, vector<64x32xf32>
    %cst_57 = arith.constant dense<0.000000e+00> : vector<16x32xf32>
    %160 = tpu.matmul %158, %159, %cst_57 {dimension_numbers = #tpu.dot_dimension_numbers<[1], [0], [0], [1], [0, 0, 1, 1], [], []>} : vector<16x64xf32>, vector<64x32xf32>, vector<16x32xf32> -> vector<16x32xf32>
    %161 = arith.addf %128, %160 : vector<16x32xf32>
    %c0_58 = arith.constant 0 : index
    %c0_59 = arith.constant 0 : index
    %162 = vector.load %arg11[%c0_58, %c0_59] : memref<16x32xf32, #tpu.memory_space<vmem>>, vector<16x32xf32>
    tpu.vector_store %arg11[%c0_58, %c0_59], %161 {strides = array<i32>} : memref<16x32xf32, #tpu.memory_space<vmem>>, vector<16x32xf32>,
    return
  }
  func.func @transform_0(%arg0: i32) -> (i32, i32) {
    %c0_i32 = arith.constant 0 : i32
    %c0_i32_0 = arith.constant 0 : i32
    %c0_i32_1 = arith.constant 0 : i32
    return %c0_i32, %c0_i32_0 : i32, i32
  }
  func.func @transform_1(%arg0: i32) -> (i32, i32) {
    %c0_i32 = arith.constant 0 : i32
    %c0_i32_0 = arith.constant 0 : i32
    %c0_i32_1 = arith.constant 0 : i32
    return %c0_i32, %c0_i32_0 : i32, i32
  }
  func.func @transform_2(%arg0: i32) -> (i32, i32) {
    %c0_i32 = arith.constant 0 : i32
    %c0_i32_0 = arith.constant 0 : i32
    %c0_i32_1 = arith.constant 0 : i32
    return %c0_i32, %c0_i32_0 : i32, i32
  }
  func.func @transform_3(%arg0: i32) -> (i32, i32) {
    %c0_i32 = arith.constant 0 : i32
    %c0_i32_0 = arith.constant 0 : i32
    %c0_i32_1 = arith.constant 0 : i32
    return %c0_i32, %c0_i32_0 : i32, i32
  }
  func.func @transform_4(%arg0: i32) -> (i32, i32) {
    %c0_i32 = arith.constant 0 : i32
    %c0_i32_0 = arith.constant 0 : i32
    %c0_i32_1 = arith.constant 0 : i32
    return %c0_i32, %c0_i32_0 : i32, i32
  }
  func.func @transform_5(%arg0: i32) -> (i32, i32) {
    %c0_i32 = arith.constant 0 : i32
    %c0_i32_0 = arith.constant 0 : i32
    %c0_i32_1 = arith.constant 0 : i32
    return %c0_i32, %c0_i32_0 : i32, i32
  }
  func.func @transform_6(%arg0: i32) -> (i32, i32) {
    %c0_i32 = arith.constant 0 : i32
    %c0_i32_0 = arith.constant 0 : i32
    %c0_i32_1 = arith.constant 0 : i32
    return %c0_i32, %c0_i32_0 : i32, i32
  }
  func.func @transform_7(%arg0: i32) -> (i32, i32) {
    %c0_i32 = arith.constant 0 : i32
    %c0_i32_0 = arith.constant 0 : i32
    %c0_i32_1 = arith.constant 0 : i32
    return %c0_i32, %c0_i32_0 : i32, i32
  }
  func.func @transform_8(%arg0: i32) -> (i32, i32) {
    %c0_i32 = arith.constant 0 : i32
    %c0_i32_0 = arith.constant 0 : i32
    %c0_i32_1 = arith.constant 0 : i32
    return %c0_i32, %c0_i32_0 : i32, i32
  }
  func.func @transform_9(%arg0: i32) -> (i32, i32) {
    %c0_i32 = arith.constant 0 : i32
    %c0_i32_0 = arith.constant 0 : i32
    %c0_i32_1 = arith.constant 0 : i32
    return %c0_i32, %c0_i32_0 : i32, i32
  }
  func.func @transform_10(%arg0: i32) -> (i32, i32) {
    %c0_i32 = arith.constant 0 : i32
    %c0_i32_0 = arith.constant 0 : i32
    %c0_i32_1 = arith.constant 0 : i32
    return %c0_i32, %c0_i32_0 : i32, i32
  }
}

</mosaic_0001>

<bundles_post_ra>
// kernel: gemma_decoder_layer.1
= control target key start
LH: loop header
LB: loop body
LE: loop exit
PB: predicated region body
PF: predicated region fallthrough
CT: control target
= control target key end

     0   :  { %vm50_vm0 = vcmask 261120   ;;  %s2487_s0 = inlined_call_operand.vmem [shape: f32[16,32], index: 0, kind: input, shape index: {}]   ;;  %s2488_s1 = inlined_call_operand.vmem [shape: f32[16,16], index: 1, kind: input, shape index: {}]   ;;  %s2489_s2 = inlined_call_operand.vmem [shape: f32[16,48], index: 2, kind: input, shape index: {}]   ;;  %s2490_s3 = inlined_call_operand.vmem [shape: f32[16,48], index: 3, kind: input, shape index: {}]   ;;  %s2491_s4 = inlined_call_operand.vmem [shape: f32[1,32], index: 4, kind: input, shape index: {}]   ;;  %s2492_s5 = inlined_call_operand.vmem [shape: f32[32,128], index: 5, kind: input, shape index: {}]   ;;  %s2493_s6 = inlined_call_operand.vmem [shape: f32[64,32], index: 6, kind: input, shape index: {}]   ;;  %s2494_s7 = inlined_call_operand.vmem [shape: f32[1,32], index: 7, kind: input, shape index: {}]   ;;  %s2495_s8 = inlined_call_operand.vmem [shape: f32[32,128], index: 8, kind: input, shape index: {}]   ;;  %s2496_s9 = inlined_call_operand.vmem [shape: f32[64,32], index: 9, kind: input, shape index: {}]   ;;  %s2497_s10 = inlined_call_operand.hbm [shape: f32[16,32], index: 10, kind: output, shape index: {}]  }
   0x1   :  { %v2140_v0 = vld [vmem:[%s2487_s0] sm:$0xff]  ;;  %v2145_v1 = vld [vmem:[%s2487_s0 + $0x8] sm:$0xff] }
   0x2   :  { %15 = vsyncpa [#allocation3], 0  ;;  %v48_v2 = vmul.f32 %v2140_v0, %v2140_v0  ;;  %v49_v3 = vmul.f32 %v2145_v1, %v2145_v1  ;;  %v77_v6 = vld [vmem:[%s2492_s5 + $0x18] sm:$0xff]  ;;  %v76_v7 = vld [vmem:[%s2492_s5 + $0x10] sm:$0xff]  ;;  %s2066_s28 = smov 48   ;;  %v67_v19 = vlaneseq  ;;  %vm213_vm1 = vcmask 64512  }
   0x3   :  { %1840 = vmatprep.subr.mxu0 %v77_v6  ;;  %v75_v8 = vld [vmem:[%s2492_s5 + $0x8] sm:$0xff]  ;;  %v74_v9 = vld [vmem:[%s2492_s5] sm:$0xff]  ;;  %vm390_vm2 = vcmask 130048   ;;  %s2070_s17 = smov 72   ;;  %s2071_s18 = smov 120   ;;  %vm1371_vm3 = vcmask 392192  }
   0x4   :  { %v51_v4 = vsel %vm50_vm0, %v48_v2, 0.0  ;;  %v54_v5 = vsel %vm50_vm0, %v49_v3, 0.0  ;;  %1841 = vmatpush3.msra.mxu0 %v77_v6  ;;  %v43_v10 = vld [vmem:[%s2490_s3 + $0x8] sm:$0xff]  ;;  %v42_v12 = vld [vmem:[%s2490_s3] sm:$0xff]  ;;  %v2181_v21 = vshrl.u32 %v67_v19, 7  ;;  %s2072_s19 = smov 88  }
   0x5   :  { %52 = vadd.xlane.f32.xlu0 %v51_v4  ;;  %1842 = vmatprep.subr.mxu0 %v76_v7  ;;  %v41_v11 = vld [vmem:[%s2489_s2 + $0x8] sm:$0xff]  ;;  %v40_v13 = vld [vmem:[%s2489_s2] sm:$0xff]  ;;  %s2067_s2 = smov 80   ;;  %s2073_s0 = smov 40   ;;  %vm1382_vm4 = vcmask 523264  }
   0x6   :  { %1843 = vmatpush3.msra.mxu0 %v76_v7  ;;  %165 = vrot.lane.b32.xlu1 %v43_v10, %s2066_s28  ;;  %v44_v22 = vld [vmem:[%s2491_s4] sm:$0x1]  ;;  %v69_v24 = vsub.s32 0, %v2181_v21  ;;  %s2068_s4 = smov 96   ;;  %v2256_v3 = vld [vmem:[%s2488_s1 + $0x8] sm:$0xff]  ;;  %s2074_s20 = smov 64  }
   0x7   :  { %1844 = vmatprep.subr.mxu0 %v75_v8  ;;  %v45_v23 = vadd.f32 1.0, %v44_v22  ;;  %v2261_v6 = vld [vmem:[%s2488_s1] sm:$0xff]  ;;  %s2069_s1 = smov 32   ;;  %s2075_s21 = smov 112   ;;  %v1608_v21 = vld [vmem:[%s2496_s9 + $0x28] sm:$0xff] }
   0x8   :  { %1845 = vmatpush3.msra.mxu0 %v75_v8  ;;  %s2076_s22 = smov 16   ;;  %s2077_s23 = smov 56  }
   0x9   :  { %55 = vadd.xlane.f32.xlu0 %v54_v5  ;;  %1846 = vmatprep.subr.mxu0 %v74_v9  ;;  %v70_v25 = vrot.slane %v45_v23, %v69_v24  ;;  %s2078_s24 = smov 104  }
   0xa   :  { %1847 = vmatpush3.msra.mxu0 %v74_v9  ;;  %163 = vrot.lane.b32.xlu1 %v42_v12, %s2066_s28 }
   0xe   :  { %183 = vrot.lane.b32.xlu1 %v40_v13, %s2066_s28 }
  0x1f   :  { %185 = vrot.lane.b32.xlu0 %v41_v11, %s2066_s28 }
  0x78   :  { %v166_v32 = vpop.permute.xlu1 %165 }
  0x7c   :  { %v164_v37 = vpop.permute.xlu1 %163 }
  0x80   :  { %v184_v40 = vpop.permute.xlu1 %183 }
  0x8e   :  { %v53_v14 = vpop.xlane.xlu0 %52 }
  0x8f   :  { %v58_v15 = vmul.f32 0.03125, %v53_v14 }
  0x91   :  { %v60_v16 = vadd.f32 1e-06, %v58_v15 }
  0x92   :  { %v56_v17 = vpop.xlane.xlu0 %55 }
  0x93   :  { %2000 = vrsqrt.f32 %v60_v16  ;;  %v59_v18 = vmul.f32 0.03125, %v56_v17 }
  0x95   :  { %v61_v20 = vadd.f32 1e-06, %v59_v18 }
  0x96   :  { %v186_v42 = vpop.permute.xlu0 %185 }
  0x97   :  { %2002 = vrsqrt.f32 %v61_v20 }
  0xa0   :  { %v2001_v26 = vpop.eup %2000 }
  0xa1   :  { %v64_v27 = vmul.f32 %v2001_v26, %v2140_v0 }
  0xa3   :  { %v72_v28 = vmul.f32 %v70_v25, %v64_v27 }
  0xa4   :  { %v2003_v29 = vpop.eup %2002 }
  0xa5   :  { %v65_v30 = vmul.f32 %v2003_v29, %v2145_v1  ;;  %1848 = vmatprep.mubr.msk.f32.mxu0 %vm50_vm0, %v72_v28 }
  0xa7   :  { %v73_v31 = vmul.f32 %v70_v25, %v65_v30 }
  0xa9   :  { %1849 = vmatmul.mubr.msk.f32.vlgmr.msra.gmra.mxu0 %vm50_vm0, %v73_v31 }
 0x169   :  { %v2193_v33 = vpop.f32.mrf.mxu0 }
 0x16a   :  { %v170_v34 = vmul.f32 %v2193_v33, %v166_v32  ;;  %v192_v35 = vmul.f32 %v2193_v33, %v43_v10  ;;  %v160_v41 = vmul.f32 %v2193_v33, %v41_v11  ;;  %v190_v45 = vmul.f32 %v2193_v33, %v186_v42 }
 0x16b   :  { %v2198_v36 = vpop.f32.mrf.mxu0 }
 0x16c   :  { %175 = vrot.lane.b32.xlu1 %v170_v34, %s2067_s2  ;;  %v169_v38 = vmul.f32 %v164_v37, %v2198_v36  ;;  %v191_v39 = vmul.f32 %v2198_v36, %v42_v12  ;;  %v159_v48 = vmul.f32 %v2198_v36, %v40_v13  ;;  %v189_v51 = vmul.f32 %v184_v40, %v2198_v36 }
 0x170   :  { %197 = vrot.lane.b32.xlu1 %v192_v35, %s2066_s28 }
 0x174   :  { %173 = vrot.lane.b32.xlu1 %v169_v38, %s2067_s2 }
 0x178   :  { %195 = vrot.lane.b32.xlu1 %v191_v39, %s2066_s28 }
 0x1de   :  { %v176_v43 = vpop.permute.xlu1 %175 }
 0x1df   :  { %v2206_v44 = vsub.f32 %v160_v41, %v176_v43 }
 0x1e1   :  { %301 = vrot.lane.b32.xlu0 %v2206_v44, %s2068_s4 }
 0x1e2   :  { %v198_v46 = vpop.permute.xlu1 %197 }
 0x1e3   :  { %v2210_v47 = vadd.f32 %v198_v46, %v190_v45 }
 0x1e5   :  { %211 = vrot.lane.b32.xlu1 %v2210_v47, %s2066_s28 }
 0x1e6   :  { %v174_v49 = vpop.permute.xlu1 %173 }
 0x1e7   :  { %v2215_v50 = vsub.f32 %v159_v48, %v174_v49 }
 0x1e9   :  { %299 = vrot.lane.b32.xlu0 %v2215_v50, %s2068_s4  ;;  %1862 = vmatprep.mubr.msk.f32.mxu0 %vm213_vm1, %v2215_v50 }
 0x1ea   :  { %v196_v52 = vpop.permute.xlu1 %195 }
 0x1eb   :  { %v2221_v53 = vadd.f32 %v196_v52, %v189_v51 }
 0x1ed   :  { %207 = vrot.lane.b32.xlu0 %v2210_v47, %s2067_s2  ;;  %209 = vrot.lane.b32.xlu1 %v2221_v53, %s2066_s28 }
 0x1f1   :  { %205 = vrot.lane.b32.xlu1 %v2221_v53, %s2067_s2 }
 0x253   :  { %v2229_v54 = vpop.permute.xlu0 %301 }
 0x254   :  { %1858 = vmatprep.subr.msk.mxu0 %vm213_vm1, %v2229_v54 }
 0x255   :  { %1859 = vmatpush3.xpose.msk.msra.mxu0 %vm213_vm1, %v2229_v54 }
 0x257   :  { %v212_v55 = vpop.permute.xlu1 %211 }
 0x258   :  { %1851 = vmatprep.subr.msk.mxu1 %vm213_vm1, %v212_v55 }
 0x259   :  { %1852 = vmatpush3.xpose.msk.msra.mxu1 %vm213_vm1, %v212_v55 }
 0x25b   :  { %v2237_v56 = vpop.permute.xlu0 %299 }
 0x25c   :  { %1860 = vmatprep.subr.msk.mxu0 %vm213_vm1, %v2237_v56 }
 0x25d   :  { %1861 = vmatpush3.xpose.msk.msra.mxu0 %vm213_vm1, %v2237_v56 }
 0x25f   :  { %v210_v57 = vpop.permute.xlu1 %209  ;;  %v208_v59 = vpop.permute.xlu0 %207 }
 0x260   :  { %1853 = vmatprep.subr.msk.mxu1 %vm213_vm1, %v210_v57  ;;  %1863 = vmatmul.mubr.msk.f32.vlgmr.msra.gmra.mxu0 %vm213_vm1, %v2206_v44 }
 0x261   :  { %1854 = vmatpush3.xpose.msk.msra.mxu1 %vm213_vm1, %v210_v57 }
 0x262   :  { %1872 = vmatprep.subr.msk.mxu1 %vm213_vm1, %v212_v55 }
 0x263   :  { %v206_v58 = vpop.permute.xlu1 %205 }
 0x264   :  { %1855 = vmatprep.mubr.msk.f32.mxu1 %vm213_vm1, %v206_v58 }
 0x265   :  { %1856 = vmatmul.mubr.msk.f32.vlgmr.msra.gmra.mxu1 %vm213_vm1, %v208_v59 }
 0x266   :  { %1873 = vmatpush3.xpose.msk.msra.mxu1 %vm213_vm1, %v212_v55 }
 0x267   :  { %1874 = vmatprep.subr.msk.mxu1 %vm213_vm1, %v210_v57 }
 0x26a   :  { %1875 = vmatpush3.xpose.msk.msra.mxu1 %vm213_vm1, %v210_v57 }
 0x320   :  { %v1864_v60 = vpop.f32.mrf.mxu0 }
 0x322   :  { %v377_v63 = vpop.f32.mrf.mxu0 }
 0x325   :  { %v1857_v61 = vpop.f32.mrf.mxu1 }
 0x326   :  { %v383_v62 = vadd.f32 %v1864_v60, %v1857_v61 }
 0x327   :  { %v288_v2 = vpop.f32.mrf.mxu1 }
 0x328   :  { %v387_v4 = vmul.f32 0.25, %v383_v62  ;;  %v378_v5 = vadd.f32 %v377_v63, %v288_v2 }
 0x32a   :  { %v386_v7 = vmul.f32 0.25, %v378_v5  ;;  %v389_v8 = vadd.f32 %v387_v4, %v2256_v3 }
 0x32c   :  { %v394_v9 = vsel %vm390_vm2, %v389_v8, -inf  ;;  %v388_v10 = vadd.f32 %v386_v7, %v2261_v6 }
 0x32d   :  { %395 = vmax.xlane.f32.xlu0 %v394_v9 }
 0x32e   :  { %v391_v11 = vsel %vm390_vm2, %v388_v10, -inf }
 0x32f   :  { %392 = vmax.xlane.f32.xlu1 %v391_v11 }
 0x3b6   :  { %v396_v12 = vpop.xlane.xlu0 %395 }
 0x3b7   :  { %v398_v13 = vsub.f32 %v389_v8, %v396_v12 }
 0x3b8   :  { %v393_v14 = vpop.xlane.xlu1 %392 }
 0x3b9   :  { %v401_v15 = vmul.f32 1.442695, %v398_v13  ;;  %v397_v16 = vsub.f32 %v388_v10, %v393_v14 }
 0x3bb   :  { %2004 = vpow2.f32 %v401_v15  ;;  %v399_v17 = vmul.f32 1.442695, %v397_v16 }
 0x3bd   :  { %2006 = vpow2.f32 %v399_v17 }
 0x3c8   :  { %v2005_v18 = vpop.eup %2004 }
 0x3c9   :  { %v406_v19 = vsel %vm390_vm2, %v2005_v18, 0.0 }
 0x3ca   :  { %v2007_v20 = vpop.eup %2006  ;;  %407 = vadd.xlane.f32.xlu1 %v406_v19 }
 0x3cb   :  { %v403_v22 = vsel %vm390_vm2, %v2007_v20, 0.0 }
 0x3cc   :  { %404 = vadd.xlane.f32.xlu0 %v403_v22 }
 0x3db   :  { %415 = vrot.lane.b32.xlu1 %v2198_v36, %s2069_s1 }
 0x3df   :  { %502 = vrot.lane.b32.xlu1 %v2221_v53, %s2070_s17 }
 0x3e2   :  { %417 = vrot.lane.b32.xlu0 %v2193_v33, %s2069_s1 }
 0x3e3   :  { %504 = vrot.lane.b32.xlu1 %v2210_v47, %s2070_s17 }
 0x3e6   :  { %585 = vrot.lane.b32.xlu0 %v2215_v50, %s2071_s18 }
 0x3ea   :  { %587 = vrot.lane.b32.xlu0 %v2206_v44, %s2071_s18 }
 0x453   :  { %v408_v23 = vpop.xlane.xlu1 %407 }
 0x454   :  { %2008 = vrcp.f32 %v408_v23 }
 0x455   :  { %v405_v25 = vpop.xlane.xlu0 %404 }
 0x456   :  { %2010 = vrcp.f32 %v405_v25 }
 0x457   :  { %v416_v26 = vpop.permute.xlu1 %415 }
 0x459   :  { %v418_v27 = vpop.permute.xlu0 %417 }
 0x45a   :  { %1865 = vmatprep.subr.mxu0 %v418_v27  ;;  %1886 = vmatprep.subr.mxu1 %v418_v27 }
 0x45b   :  { %1866 = vmatpush3.msra.mxu0 %v418_v27  ;;  %v503_v28 = vpop.permute.xlu1 %502 }
 0x45c   :  { %1867 = vmatprep.subr.mxu0 %v416_v26  ;;  %1876 = vmatprep.mubr.msk.f32.mxu1 %vm213_vm1, %v503_v28 }
 0x45d   :  { %1868 = vmatpush3.msra.mxu0 %v416_v26  ;;  %v586_v35 = vpop.permute.xlu0 %585 }
 0x45e   :  { %1879 = vmatprep.subr.msk.mxu0 %vm213_vm1, %v2229_v54 }
 0x45f   :  { %v505_v29 = vpop.permute.xlu1 %504 }
 0x460   :  { %1877 = vmatmul.mubr.msk.f32.vlgmr.msra.gmra.mxu1 %vm213_vm1, %v505_v29 }
 0x461   :  { %1887 = vmatpush3.msra.mxu1 %v418_v27  ;;  %v2009_v30 = vpop.eup %2008  ;;  %v588_v37 = vpop.permute.xlu0 %587 }
 0x462   :  { %1888 = vmatprep.subr.mxu1 %v416_v26  ;;  %v412_v34 = vmul.f32 %v2009_v30, %v2005_v18 }
 0x463   :  { %v2011_v31 = vpop.eup %2010  ;;  %1889 = vmatpush3.msra.mxu1 %v416_v26 }
 0x464   :  { %v411_v32 = vmul.f32 %v2011_v31, %v2007_v20 }
 0x466   :  { %1869 = vmatprep.mubr.msk.f32.mxu0 %vm390_vm2, %v411_v32 }
 0x467   :  { %1870 = vmatmul.mubr.msk.f32.vlgmr.msra.gmra.mxu0 %vm390_vm2, %v412_v34 }
 0x468   :  { %1880 = vmatpush3.xpose.msk.msra.mxu0 %vm213_vm1, %v2229_v54  ;;  %1883 = vmatprep.mubr.msk.f32.mxu0 %vm213_vm1, %v586_v35 }
 0x469   :  { %1881 = vmatprep.subr.msk.mxu0 %vm213_vm1, %v2237_v56 }
 0x46c   :  { %1882 = vmatpush3.xpose.msk.msra.mxu0 %vm213_vm1, %v2237_v56 }
 0x46f   :  { %1884 = vmatmul.mubr.msk.f32.vlgmr.msra.gmra.mxu0 %vm213_vm1, %v588_v37 }
 0x520   :  { %v1878_v39 = vpop.f32.mrf.mxu1 }
 0x522   :  { %v576_v43 = vpop.f32.mrf.mxu1 }
 0x527   :  { %v2291_v38 = vpop.f32.mrf.mxu0 }
 0x529   :  { %v2293_v40 = vpop.f32.mrf.mxu0 }
 0x52f   :  { %v1885_v41 = vpop.f32.mrf.mxu0 }
 0x530   :  { %v665_v42 = vadd.f32 %v1885_v41, %v1878_v39 }
 0x531   :  { %v659_v45 = vpop.f32.mrf.mxu0 }
 0x532   :  { %v669_v46 = vmul.f32 0.25, %v665_v42  ;;  %v660_v48 = vadd.f32 %v659_v45, %v576_v43 }
 0x534   :  { %v668_v49 = vmul.f32 0.25, %v660_v48  ;;  %v671_v51 = vadd.f32 %v669_v46, %v2256_v3 }
 0x536   :  { %v675_v52 = vsel %vm390_vm2, %v671_v51, -inf  ;;  %v670_v54 = vadd.f32 %v668_v49, %v2261_v6 }
 0x537   :  { %676 = vmax.xlane.f32.xlu0 %v675_v52 }
 0x538   :  { %v672_v55 = vsel %vm390_vm2, %v670_v54, -inf }
 0x539   :  { %673 = vmax.xlane.f32.xlu1 %v672_v55 }
 0x54a   :  { %872 = vrot.lane.b32.xlu1 %v2206_v44, %s2072_s19 }
 0x54d   :  { %781 = vrot.lane.b32.xlu0 %v2210_v47, %s2073_s0 }
 0x54e   :  { %779 = vrot.lane.b32.xlu1 %v2221_v53, %s2073_s0 }
 0x5c0   :  { %v677_v56 = vpop.xlane.xlu0 %676 }
 0x5c1   :  { %v679_v57 = vsub.f32 %v671_v51, %v677_v56 }
 0x5c2   :  { %v674_v58 = vpop.xlane.xlu1 %673 }
 0x5c3   :  { %v682_v59 = vmul.f32 1.442695, %v679_v57  ;;  %v678_v60 = vsub.f32 %v670_v54, %v674_v58 }
 0x5c4   :  { %v782_v61 = vpop.permute.xlu0 %781 }
 0x5c5   :  { %2012 = vpow2.f32 %v682_v59  ;;  %v680_v62 = vmul.f32 1.442695, %v678_v60  ;;  %1893 = vmatprep.subr.msk.mxu0 %vm213_vm1, %v782_v61 }
 0x5c6   :  { %1894 = vmatpush3.xpose.msk.msra.mxu0 %vm213_vm1, %v782_v61  ;;  %v2305_v63 = vpop.permute.xlu1 %872 }
 0x5c7   :  { %2014 = vpow2.f32 %v680_v62  ;;  %1900 = vmatprep.subr.msk.mxu1 %vm213_vm1, %v2305_v63 }
 0x5ca   :  { %v780_v2 = vpop.permute.xlu1 %779 }
 0x5cb   :  { %1895 = vmatprep.subr.msk.mxu0 %vm213_vm1, %v780_v2 }
 0x5cc   :  { %1896 = vmatpush3.xpose.msk.msra.mxu0 %vm213_vm1, %v780_v2 }
 0x5d2   :  { %v2013_v4 = vpop.eup %2012 }
 0x5d3   :  { %v687_v5 = vsel %vm390_vm2, %v2013_v4, 0.0 }
 0x5d4   :  { %v2015_v7 = vpop.eup %2014  ;;  %688 = vadd.xlane.f32.xlu1 %v687_v5 }
 0x5d5   :  { %v684_v8 = vsel %vm390_vm2, %v2015_v7, 0.0 }
 0x5d6   :  { %685 = vadd.xlane.f32.xlu0 %v684_v8 }
 0x5e5   :  { %775 = vrot.lane.b32.xlu1 %v2221_v53, %s2074_s20 }
 0x5e9   :  { %777 = vrot.lane.b32.xlu1 %v2210_v47, %s2074_s20 }
 0x5ec   :  { %870 = vrot.lane.b32.xlu0 %v2215_v50, %s2072_s19 }
 0x5f0   :  { %866 = vrot.lane.b32.xlu0 %v2215_v50, %s2075_s21 }
 0x5f4   :  { %868 = vrot.lane.b32.xlu0 %v2206_v44, %s2075_s21 }
 0x65d   :  { %v689_v9 = vpop.xlane.xlu1 %688 }
 0x65e   :  { %2016 = vrcp.f32 %v689_v9 }
 0x65f   :  { %v686_v10 = vpop.xlane.xlu0 %685 }
 0x660   :  { %2018 = vrcp.f32 %v686_v10 }
 0x661   :  { %v776_v11 = vpop.permute.xlu1 %775 }
 0x662   :  { %1897 = vmatprep.mubr.msk.f32.mxu0 %vm213_vm1, %v776_v11 }
 0x663   :  { %v2323_v13 = vpop.permute.xlu0 %870 }
 0x665   :  { %v778_v12 = vpop.permute.xlu1 %777 }
 0x666   :  { %1898 = vmatmul.mubr.msk.f32.vlgmr.msra.gmra.mxu0 %vm213_vm1, %v778_v12 }
 0x667   :  { %v867_v18 = vpop.permute.xlu0 %866 }
 0x66b   :  { %v2017_v14 = vpop.eup %2016  ;;  %v869_v19 = vpop.permute.xlu0 %868 }
 0x66c   :  { %v693_v17 = vmul.f32 %v2017_v14, %v2013_v4 }
 0x66d   :  { %v2019_v15 = vpop.eup %2018 }
 0x66e   :  { %v692_v16 = vmul.f32 %v2019_v15, %v2015_v7 }
 0x670   :  { %1890 = vmatprep.mubr.msk.f32.mxu1 %vm390_vm2, %v692_v16 }
 0x671   :  { %1891 = vmatmul.mubr.msk.f32.vlgmr.msra.gmra.mxu1 %vm390_vm2, %v693_v17 }
 0x672   :  { %1901 = vmatpush3.xpose.msk.msra.mxu1 %vm213_vm1, %v2305_v63  ;;  %1904 = vmatprep.mubr.msk.f32.mxu1 %vm213_vm1, %v867_v18 }
 0x673   :  { %1902 = vmatprep.subr.msk.mxu1 %vm213_vm1, %v2323_v13 }
 0x676   :  { %1903 = vmatpush3.xpose.msk.msra.mxu1 %vm213_vm1, %v2323_v13 }
 0x677   :  { %1914 = vmatprep.subr.msk.mxu1 %vm213_vm1, %v782_v61 }
 0x679   :  { %1905 = vmatmul.mubr.msk.f32.vlgmr.msra.gmra.mxu1 %vm213_vm1, %v869_v19 }
 0x67a   :  { %1915 = vmatpush3.xpose.msk.msra.mxu1 %vm213_vm1, %v782_v61 }
 0x67b   :  { %1916 = vmatprep.subr.msk.mxu1 %vm213_vm1, %v780_v2 }
 0x67e   :  { %1917 = vmatpush3.xpose.msk.msra.mxu1 %vm213_vm1, %v780_v2 }
 0x726   :  { %v1899_v22 = vpop.f32.mrf.mxu0 }
 0x728   :  { %v857_v27 = vpop.f32.mrf.mxu0 }
 0x731   :  { %v2339_v20 = vpop.f32.mrf.mxu1 }
 0x733   :  { %v2341_v23 = vpop.f32.mrf.mxu1 }
 0x739   :  { %v1906_v25 = vpop.f32.mrf.mxu1 }
 0x73a   :  { %v954_v26 = vadd.f32 %v1906_v25, %v1899_v22 }
 0x73b   :  { %v948_v28 = vpop.f32.mrf.mxu1 }
 0x73c   :  { %v958_v29 = vmul.f32 0.25, %v954_v26  ;;  %v949_v30 = vadd.f32 %v948_v28, %v857_v27 }
 0x73e   :  { %v957_v31 = vmul.f32 0.25, %v949_v30  ;;  %v960_v32 = vadd.f32 %v958_v29, %v2256_v3 }
 0x740   :  { %v964_v34 = vsel %vm390_vm2, %v960_v32, -inf  ;;  %v959_v35 = vadd.f32 %v957_v31, %v2261_v6 }
 0x741   :  { %965 = vmax.xlane.f32.xlu0 %v964_v34  ;;  %v1378_v34 = vld [vmem:[%s2493_s6 + $0x20] sm:$0xff] }
 0x742   :  { %v961_v37 = vsel %vm390_vm2, %v959_v35, -inf }
 0x743   :  { %962 = vmax.xlane.f32.xlu1 %v961_v37  ;;  %v1376_v37 = vld [vmem:[%s2493_s6 + $0x10] sm:$0xff] }
 0x7ca   :  { %v966_v39 = vpop.xlane.xlu0 %965 }
 0x7cb   :  { %v968_v41 = vsub.f32 %v960_v32, %v966_v39  ;;  %v1379_v32 = vld [vmem:[%s2493_s6 + $0x28] sm:$0xff] }
 0x7cc   :  { %v963_v42 = vpop.xlane.xlu1 %962  ;;  %v1375_v39 = vld [vmem:[%s2493_s6 + $0x8] sm:$0xff] }
 0x7cd   :  { %v971_v43 = vmul.f32 1.442695, %v968_v41  ;;  %v967_v45 = vsub.f32 %v959_v35, %v963_v42  ;;  %v1377_v35 = vld [vmem:[%s2493_s6 + $0x18] sm:$0xff]  ;;  %v1374_v41 = vld [vmem:[%s2493_s6] sm:$0xff] }
 0x7cf   :  { %2020 = vpow2.f32 %v971_v43  ;;  %v969_v46 = vmul.f32 1.442695, %v967_v45 }
 0x7d1   :  { %2022 = vpow2.f32 %v969_v46 }
 0x7dc   :  { %v2021_v48 = vpop.eup %2020 }
 0x7dd   :  { %v976_v49 = vsel %vm390_vm2, %v2021_v48, 0.0 }
 0x7de   :  { %v2023_v51 = vpop.eup %2022  ;;  %977 = vadd.xlane.f32.xlu1 %v976_v49 }
 0x7df   :  { %v973_v52 = vsel %vm390_vm2, %v2023_v51, 0.0 }
 0x7e0   :  { %974 = vadd.xlane.f32.xlu0 %v973_v52 }
 0x7ef   :  { %983 = vrot.lane.b32.xlu1 %v2198_v36, %s2076_s22 }
 0x7f3   :  { %1070 = vrot.lane.b32.xlu1 %v2221_v53, %s2077_s23 }
 0x7f6   :  { %985 = vrot.lane.b32.xlu0 %v2193_v33, %s2076_s22 }
 0x7f7   :  { %1072 = vrot.lane.b32.xlu1 %v2210_v47, %s2077_s23 }
 0x7fa   :  { %1153 = vrot.lane.b32.xlu0 %v2215_v50, %s2078_s24 }
 0x7fe   :  { %1155 = vrot.lane.b32.xlu0 %v2206_v44, %s2078_s24 }
 0x867   :  { %v978_v54 = vpop.xlane.xlu1 %977 }
 0x868   :  { %2024 = vrcp.f32 %v978_v54 }
 0x869   :  { %v975_v55 = vpop.xlane.xlu0 %974 }
 0x86a   :  { %2026 = vrcp.f32 %v975_v55 }
 0x86b   :  { %v984_v56 = vpop.permute.xlu1 %983 }
 0x86d   :  { %v986_v57 = vpop.permute.xlu0 %985 }
 0x86e   :  { %1907 = vmatprep.subr.mxu0 %v986_v57  ;;  %1928 = vmatprep.subr.mxu1 %v986_v57 }
 0x86f   :  { %1908 = vmatpush3.msra.mxu0 %v986_v57  ;;  %v1071_v36 = vpop.permute.xlu1 %1070 }
 0x870   :  { %1909 = vmatprep.subr.mxu0 %v984_v56  ;;  %1918 = vmatprep.mubr.msk.f32.mxu1 %vm213_vm1, %v1071_v36 }
 0x871   :  { %1910 = vmatpush3.msra.mxu0 %v984_v56  ;;  %v1154_v58 = vpop.permute.xlu0 %1153 }
 0x872   :  { %1921 = vmatprep.subr.msk.mxu0 %vm213_vm1, %v2305_v63 }
 0x873   :  { %v1073_v33 = vpop.permute.xlu1 %1072 }
 0x874   :  { %1919 = vmatmul.mubr.msk.f32.vlgmr.msra.gmra.mxu1 %vm213_vm1, %v1073_v33 }
 0x875   :  { %1929 = vmatpush3.msra.mxu1 %v986_v57  ;;  %v2025_v44 = vpop.eup %2024  ;;  %v1156_v59 = vpop.permute.xlu0 %1155 }
 0x876   :  { %1930 = vmatprep.subr.mxu1 %v984_v56  ;;  %v982_v53 = vmul.f32 %v2025_v44, %v2021_v48 }
 0x877   :  { %v2027_v47 = vpop.eup %2026  ;;  %1931 = vmatpush3.msra.mxu1 %v984_v56 }
 0x878   :  { %v981_v50 = vmul.f32 %v2027_v47, %v2023_v51 }
 0x87a   :  { %1911 = vmatprep.mubr.msk.f32.mxu0 %vm390_vm2, %v981_v50 }
 0x87b   :  { %1912 = vmatmul.mubr.msk.f32.vlgmr.msra.gmra.mxu0 %vm390_vm2, %v982_v53 }
 0x87c   :  { %1922 = vmatpush3.xpose.msk.msra.mxu0 %vm213_vm1, %v2305_v63  ;;  %1925 = vmatprep.mubr.msk.f32.mxu0 %vm213_vm1, %v1154_v58 }
 0x87d   :  { %1923 = vmatprep.subr.msk.mxu0 %vm213_vm1, %v2323_v13 }
 0x880   :  { %1924 = vmatpush3.xpose.msk.msra.mxu0 %vm213_vm1, %v2323_v13 }
 0x883   :  { %1926 = vmatmul.mubr.msk.f32.vlgmr.msra.gmra.mxu0 %vm213_vm1, %v1156_v59 }
 0x934   :  { %v1920_v61 = vpop.f32.mrf.mxu1 }
 0x936   :  { %v1144_v5 = vpop.f32.mrf.mxu1 }
 0x93b   :  { %v1913_v60 = vpop.f32.mrf.mxu0 }
 0x93d   :  { %v1061_v62 = vpop.f32.mrf.mxu0 }
 0x943   :  { %v1927_v2 = vpop.f32.mrf.mxu0 }
 0x944   :  { %v1233_v4 = vadd.f32 %v1927_v2, %v1920_v61  ;;  %v1490_v61 = vld [vmem:[%s2495_s8] sm:$0xff] }
 0x945   :  { %v1227_v7 = vpop.f32.mrf.mxu0 }
 0x946   :  { %v1237_v8 = vmul.f32 0.25, %v1233_v4  ;;  %v1228_v63 = vadd.f32 %v1227_v7, %v1144_v5 }
 0x948   :  { %v1236_v9 = vmul.f32 0.25, %v1228_v63  ;;  %v1239_v10 = vadd.f32 %v1237_v8, %v2256_v3  ;;  %v46_v63 = vld [vmem:[%s2494_s7] sm:$0x1] }
 0x94a   :  { %v1243_v11 = vsel %vm390_vm2, %v1239_v10, -inf  ;;  %v1238_v12 = vadd.f32 %v1236_v9, %v2261_v6  ;;  %v47_v9 = vadd.f32 1.0, %v46_v63 }
 0x94b   :  { %1244 = vmax.xlane.f32.xlu0 %v1243_v11 }
 0x94c   :  { %v1240_v13 = vsel %vm390_vm2, %v1238_v12, -inf }
 0x94d   :  { %1241 = vmax.xlane.f32.xlu1 %v1240_v13 }
 0x9d4   :  { %v1245_v14 = vpop.xlane.xlu0 %1244 }
 0x9d5   :  { %v1247_v15 = vsub.f32 %v1239_v10, %v1245_v14 }
 0x9d6   :  { %v1242_v16 = vpop.xlane.xlu1 %1241 }
 0x9d7   :  { %v1250_v17 = vmul.f32 1.442695, %v1247_v15  ;;  %v1246_v18 = vsub.f32 %v1238_v12, %v1242_v16  ;;  %v1486_v12 = vrot.slane %v47_v9, %v69_v24  ;;  %v1607_v24 = vld [vmem:[%s2496_s9 + $0x20] sm:$0xff] }
 0x9d9   :  { %2028 = vpow2.f32 %v1250_v17  ;;  %v1248_v19 = vmul.f32 1.442695, %v1246_v18  ;;  %v1610_v17 = vld [vmem:[%s2496_s9 + $0x38] sm:$0xff]  ;;  %v1609_v18 = vld [vmem:[%s2496_s9 + $0x30] sm:$0xff] }
 0x9db   :  { %2030 = vpow2.f32 %v1248_v19  ;;  %v1606_v19 = vld [vmem:[%s2496_s9 + $0x18] sm:$0xff] }
 0x9e6   :  { %v2029_v22 = vpop.eup %2028 }
 0x9e7   :  { %v1255_v25 = vsel %vm390_vm2, %v2029_v22, 0.0 }
 0x9e8   :  { %v2031_v3 = vpop.eup %2030  ;;  %1256 = vadd.xlane.f32.xlu1 %v1255_v25  ;;  %v1604_v25 = vld [vmem:[%s2496_s9 + $0x8] sm:$0xff] }
 0x9e9   :  { %v1252_v26 = vsel %vm390_vm2, %v2031_v3, 0.0 }
 0x9ea   :  { %1253 = vadd.xlane.f32.xlu0 %v1252_v26 }
 0x9f9   :  { %1347 = vrot.lane.b32.xlu1 %v2339_v20, %s2076_s22  ;;  %v1381_v20 = vld [vmem:[%s2493_s6 + $0x38] sm:$0xff] }
 0x9fa   :  { %1935 = vmatprep.subr.mxu0 %v1381_v20 }
 0x9fb   :  { %1936 = vmatpush3.msra.mxu0 %v1381_v20 }
 0x9fd   :  { %1353 = vrot.lane.b32.xlu1 %v1061_v62, %s2069_s1 }
 0xa00   :  { %1345 = vrot.lane.b32.xlu0 %v2341_v23, %s2076_s22  ;;  %v1380_v23 = vld [vmem:[%s2493_s6 + $0x30] sm:$0xff] }
 0xa01   :  { %1937 = vmatprep.subr.mxu0 %v1380_v23 }
 0xa02   :  { %1938 = vmatpush3.msra.mxu0 %v1380_v23 }
 0xa03   :  { %1939 = vmatprep.subr.mxu0 %v1379_v32 }
 0xa04   :  { %1355 = vrot.lane.b32.xlu0 %v1913_v60, %s2069_s1  ;;  %1940 = vmatpush3.msra.mxu0 %v1379_v32  ;;  %v1491_v60 = vld [vmem:[%s2495_s8 + $0x8] sm:$0xff] }
 0xa05   :  { %1941 = vmatprep.subr.mxu0 %v1378_v34 }
 0xa06   :  { %1942 = vmatpush3.msra.mxu0 %v1378_v34 }
 0xa07   :  { %1943 = vmatprep.subr.mxu0 %v1377_v35 }
 0xa08   :  { %1944 = vmatpush3.msra.mxu0 %v1377_v35 }
 0xa09   :  { %1945 = vmatprep.subr.mxu0 %v1376_v37 }
 0xa0a   :  { %1946 = vmatpush3.msra.mxu0 %v1376_v37 }
 0xa0b   :  { %1947 = vmatprep.subr.mxu0 %v1375_v39 }
 0xa0c   :  { %1948 = vmatpush3.msra.mxu0 %v1375_v39 }
 0xa0d   :  { %1949 = vmatprep.subr.mxu0 %v1374_v41 }
 0xa0e   :  { %1950 = vmatpush3.msra.mxu0 %v1374_v41 }
 0xa71   :  { %v1257_v6 = vpop.xlane.xlu1 %1256 }
 0xa72   :  { %2032 = vrcp.f32 %v1257_v6 }
 0xa73   :  { %v1254_v27 = vpop.xlane.xlu0 %1253 }
 0xa74   :  { %2034 = vrcp.f32 %v1254_v27 }
 0xa75   :  { %v1348_v46 = vpop.permute.xlu1 %1347 }
 0xa76   :  { %v1368_v54 = vsel %vm390_vm2, %v2291_v38, %v1348_v46 }
 0xa77   :  { %v1346_v45 = vpop.permute.xlu0 %1345 }
 0xa78   :  { %v1367_v51 = vsel %vm390_vm2, %v2293_v40, %v1346_v45 }
 0xa79   :  { %v1354_v49 = vpop.permute.xlu1 %1353 }
 0xa7a   :  { %v1369_v55 = vsel %vm50_vm0, %v1367_v51, %v1354_v49 }
 0xa7b   :  { %v1356_v48 = vpop.permute.xlu0 %1355 }
 0xa7c   :  { %v1370_v57 = vsel %vm50_vm0, %v1368_v54, %v1356_v48 }
 0xa7f   :  { %v2033_v28 = vpop.eup %2032 }
 0xa80   :  { %v1261_v31 = vmul.f32 %v2033_v28, %v2029_v22  ;;  %v1605_v22 = vld [vmem:[%s2496_s9 + $0x10] sm:$0xff] }
 0xa81   :  { %v2035_v29 = vpop.eup %2034 }
 0xa82   :  { %v1260_v30 = vmul.f32 %v2035_v29, %v2031_v3  ;;  %v1603_v3 = vld [vmem:[%s2496_s9] sm:$0xff]  ;;  %s2079_s9 = smov [#allocation2]  }
 0xa84   :  { %1932 = vmatprep.mubr.msk.f32.mxu1 %vm390_vm2, %v1260_v30 }
 0xa85   :  { %1933 = vmatmul.mubr.msk.f32.vlgmr.msra.gmra.mxu1 %vm390_vm2, %v1261_v31 }
 0xb45   :  { %v1934_v42 = vpop.f32.mrf.mxu1 }
 0xb46   :  { %1363 = vrot.lane.b32.xlu0 %v1934_v42, %s2066_s28 }
 0xb47   :  { %v1334_v43 = vpop.f32.mrf.mxu1 }
 0xb48   :  { %1361 = vrot.lane.b32.xlu1 %v1334_v43, %s2066_s28 }
 0xbb8   :  { %v1364_v52 = vpop.permute.xlu0 %1363 }
 0xbb9   :  { %v1373_v33 = vsel %vm1371_vm3, %v1370_v57, %v1364_v52 }
 0xbba   :  { %v1362_v56 = vpop.permute.xlu1 %1361 }
 0xbbb   :  { %v1372_v36 = vsel %vm1371_vm3, %v1369_v55, %v1362_v56 }
 0xbbc   :  { %1951 = vmatprep.mubr.msk.f32.mxu0 %vm1382_vm4, %v1372_v36 }
 0xbbd   :  { %1952 = vmatmul.mubr.msk.f32.vlgmr.msra.gmra.mxu0 %vm1382_vm4, %v1373_v33 }
 0xc7d   :  { %v1953_v44 = vpop.f32.mrf.mxu0 }
 0xc7e   :  { %v2420_v40 = vadd.f32 %v1953_v44, %v2145_v1  ;;  %v1493_v1 = vld [vmem:[%s2495_s8 + $0x18] sm:$0xff] }
 0xc7f   :  { %v1455_v47 = vpop.f32.mrf.mxu0  ;;  %1954 = vmatprep.subr.mxu1 %v1493_v1 }
 0xc80   :  { %v2423_v50 = vadd.f32 %v1455_v47, %v2140_v0  ;;  %v1467_v38 = vmul.f32 %v2420_v40, %v2420_v40  ;;  %v1492_v0 = vld [vmem:[%s2495_s8 + $0x10] sm:$0xff]  ;;  %1955 = vmatpush3.msra.mxu1 %v1493_v1 }
 0xc81   :  { %1956 = vmatprep.subr.mxu1 %v1492_v0 }
 0xc82   :  { %v1471_v53 = vsel %vm50_vm0, %v1467_v38, 0.0  ;;  %v1466_v58 = vmul.f32 %v2423_v50, %v2423_v50  ;;  %1957 = vmatpush3.msra.mxu1 %v1492_v0 }
 0xc83   :  { %1472 = vadd.xlane.f32.xlu0 %v1471_v53  ;;  %1958 = vmatprep.subr.mxu1 %v1491_v60 }
 0xc84   :  { %v1468_v59 = vsel %vm50_vm0, %v1466_v58, 0.0  ;;  %1959 = vmatpush3.msra.mxu1 %v1491_v60 }
 0xc85   :  { %1469 = vadd.xlane.f32.xlu1 %v1468_v59  ;;  %1960 = vmatprep.subr.mxu1 %v1490_v61 }
 0xc86   :  { %1961 = vmatpush3.msra.mxu1 %v1490_v61 }
 0xc87   :  { %1965 = vmatprep.subr.mxu1 %v1610_v17 }
 0xd0c   :  { %v1473_v62 = vpop.xlane.xlu0 %1472 }
 0xd0d   :  { %v1475_v2 = vmul.f32 0.03125, %v1473_v62 }
 0xd0e   :  { %v1470_v4 = vpop.xlane.xlu1 %1469 }
 0xd0f   :  { %v1477_v5 = vadd.f32 1e-06, %v1475_v2  ;;  %v1474_v7 = vmul.f32 0.03125, %v1470_v4 }
 0xd11   :  { %2036 = vrsqrt.f32 %v1477_v5  ;;  %v1476_v8 = vadd.f32 1e-06, %v1474_v7 }
 0xd13   :  { %2038 = vrsqrt.f32 %v1476_v8 }
 0xd1e   :  { %v2037_v10 = vpop.eup %2036 }
 0xd1f   :  { %v1481_v13 = vmul.f32 %v2037_v10, %v2420_v40 }
 0xd20   :  { %v2039_v11 = vpop.eup %2038 }
 0xd21   :  { %v1480_v14 = vmul.f32 %v2039_v11, %v2423_v50  ;;  %v1489_v16 = vmul.f32 %v1486_v12, %v1481_v13 }
 0xd23   :  { %v1488_v15 = vmul.f32 %v1486_v12, %v1480_v14 }
 0xd25   :  { %1962 = vmatprep.mubr.msk.f32.mxu1 %vm50_vm0, %v1488_v15 }
 0xd26   :  { %1963 = vmatmul.mubr.msk.f32.vlgmr.msra.gmra.mxu1 %vm50_vm0, %v1489_v16 }
 0xd27   :  { %1966 = vmatpush3.msra.mxu1 %v1610_v17 }
 0xd28   :  { %1967 = vmatprep.subr.mxu1 %v1609_v18 }
 0xd29   :  { %1968 = vmatpush3.msra.mxu1 %v1609_v18 }
 0xd2a   :  { %1969 = vmatprep.subr.mxu1 %v1608_v21 }
 0xd2b   :  { %1970 = vmatpush3.msra.mxu1 %v1608_v21 }
 0xd2c   :  { %1971 = vmatprep.subr.mxu1 %v1607_v24 }
 0xd2d   :  { %1972 = vmatpush3.msra.mxu1 %v1607_v24 }
 0xd2e   :  { %1973 = vmatprep.subr.mxu1 %v1606_v19 }
 0xd2f   :  { %1974 = vmatpush3.msra.mxu1 %v1606_v19 }
 0xd30   :  { %1975 = vmatprep.subr.mxu1 %v1605_v22 }
 0xd31   :  { %1976 = vmatpush3.msra.mxu1 %v1605_v22 }
 0xd32   :  { %1977 = vmatprep.subr.mxu1 %v1604_v25 }
 0xd33   :  { %1978 = vmatpush3.msra.mxu1 %v1604_v25 }
 0xd34   :  { %1979 = vmatprep.subr.mxu1 %v1603_v3 }
 0xd35   :  { %1980 = vmatpush3.msra.mxu1 %v1603_v3 }
 0xde6   :  { %v1964_v26 = vpop.f32.mrf.mxu1 }
 0xde7   :  { %1597 = vrot.lane.b32.xlu1 %v1964_v26, %s2074_s20  ;;  %v1576_v28 = vmul.f32 %v1964_v26, %v1964_v26 }
 0xde8   :  { %v1566_v6 = vpop.f32.mrf.mxu1 }
 0xde9   :  { %1595 = vrot.lane.b32.xlu0 %v1566_v6, %s2074_s20  ;;  %v1575_v27 = vmul.f32 %v1566_v6, %v1566_v6  ;;  %v1578_v30 = vmul.f32 %v1964_v26, %v1576_v28  ;;  %s1701_s20 = sshll.u32 %s2079_s9, 4  ;;  %s1702_s20 = int_to_ptr.vmem [resolvable:$true] %s1701_s20 }
 0xdea   :  { %s2044_s16 = scalar_lea.vmem %s1702_s20, 256  ;;  %p2049_p1 = scmp.lt.s32.totalorder %s1702_s20, %s1702_s20 }
 0xdeb   :  { %v1577_v29 = vmul.f32 %v1575_v27, %v1566_v6  ;;  %v1580_v20 = vmul.f32 0.044715, %v1578_v30  ;;  %p2045_p0 = scmp.ne.s32.totalorder %s1702_s20, %s2044_s16  ;;  %p2050_p2 = scmp.lt.s32.totalorder %s2044_s16, %s2044_s16 }
 0xded   :  { %v1579_v31 = vmul.f32 0.044715, %v1577_v29  ;;  %v1582_v32 = vadd.f32 %v1964_v26, %v1580_v20  ;;  %p2051_p3 = por %p2050_p2, %p2049_p1 }
 0xdef   :  { %v1581_v23 = vadd.f32 %v1579_v31, %v1566_v6  ;;  %v1584_v35 = vmul.f32 0.7978846, %v1582_v32  ;;  %p2052_p4 = pnand %p2051_p3, %p2045_p0 }
 0xdf1   :  { %v1583_v34 = vmul.f32 0.7978846, %v1581_v23 }
 0xdf3   :  { %2040 = vtanh.f32 %v1583_v34 }
 0xdf4   :  { %2042 = vtanh.f32 %v1584_v35 }
 0xe00   :  { %v2041_v37 = vpop.eup %2040 }
 0xe01   :  { %v2043_v39 = vpop.eup %2042  ;;  %v1587_v41 = vadd.f32 1.0, %v2041_v37 }
 0xe02   :  { %v1588_v42 = vadd.f32 1.0, %v2043_v39 }
 0xe03   :  { %v1589_v43 = vmul.f32 0.5, %v1587_v41 }
 0xe04   :  { %v1590_v45 = vmul.f32 0.5, %v1588_v42 }
 0xe05   :  { %v1591_v48 = vmul.f32 %v1589_v43, %v1566_v6 }
 0xe06   :  { %v1592_v49 = vmul.f32 %v1964_v26, %v1590_v45 }
 0xe59   :  { %v1598_v46 = vpop.permute.xlu1 %1597 }
 0xe5a   :  { %v1602_v54 = vmul.f32 %v1598_v46, %v1592_v49 }
 0xe5b   :  { %v1596_v51 = vpop.permute.xlu0 %1595 }
 0xe5c   :  { %v1601_v52 = vmul.f32 %v1596_v51, %v1591_v48 }
 0xe5e   :  { %1981 = vmatprep.mubr.msk.f32.mxu1 %vm1382_vm4, %v1601_v52 }
 0xe5f   :  { %1982 = vmatmul.mubr.msk.f32.vlgmr.msra.gmra.mxu1 %vm1382_vm4, %v1602_v54 }
 0xf1f   :  { %v1983_v55 = vpop.f32.mrf.mxu1 }
 0xf20   :  { %v1693_v56 = vadd.f32 %v1983_v55, %v2420_v40 }
 0xf21   :  { %v1683_v57 = vpop.f32.mrf.mxu1 }
 0xf22   :  { %1695 = vst.msk [vmem:[#allocation2 + $0x8] sm:$0xff] %vm50_vm0, %v1693_v56  ;;  %v1692_v36 = vadd.f32 %v1683_v57, %v2423_v50 }
 0xf24   :  { %1694 = vst.msk [vmem:[#allocation2] sm:$0xff] %vm50_vm0, %v1692_v36 }
 0xf25   :  { %2055 = shalt.err (!%p2052_p4)
}
 0xf26   :  { %s2080_s1 = smov 128   ;;  %s2081_s6 = smov 8  }
 0xf27   :  { %1707 = dma.vmem_to_hbm [thread:$0]  %s1702_s20, 256, %s2497_s10, [#allocation3], %s2080_s1, %s2080_s1, %s2081_s6  }
 0xf28   :  { %2064 = dma.done.wait [#allocation3], 256  }
 0xf29   :  { %2065 = vsyncadd [#allocation3], 4294967040 }
 0xf2a   :  { %1711 = vsyncpa [#allocation3], 1 }

</bundles_post_ra>
